<compile_context>
chip_gen: v6e
topology: v6e:2x2x1
jax: 0.10.0
libtpu: 0.0.40
codegen_flags: <defaults>
</compile_context>

<pallas_src>
import jax
import jax.numpy as jnp
from jax.experimental import pallas as pl
from jax.experimental.pallas import tpu as pltpu

THRESH = 0.5
DECAY = 0.25
TIME_WINDOW = 4
BN_EPS = 1e-5


# ----------------------------------------------------------------------------
# Tiling / budgeting helpers
# ----------------------------------------------------------------------------
def _round_up(x, m):
    return ((x + m - 1) // m) * m


def _vmem_budget():
    """Generation-aware VMEM budgets (v5e/v6e: 128 MiB; v7x: 64 MiB per TC)."""
    cap = 64 * 1024 * 1024  # conservative fallback (v7x per-TensorCore)
    try:
        info = pltpu.get_tpu_info()
        c = getattr(info, "vmem_capacity_bytes", None)
        if c:
            cap = int(c)
    except Exception:
        pass
    vmem_limit = max(32 * 1024 * 1024, min((cap * 3) // 4, 96 * 1024 * 1024))
    tile_budget = max(8 * 1024 * 1024, min(cap // 4, 32 * 1024 * 1024))
    return vmem_limit, tile_budget


def _pad_granularity(n):
    """Pad granularity for the pixel axis so large lane-dense divisor tiles
    exist for arbitrary B*H*W (waste bounded to < one granule)."""
    if n <= 128:
        return max(n, 1)
    if n < 2048:
        return 128
    if n < 16384:
        return 1024
    return 4096


def _divisor_tile(n_pad, per_col_bytes, budget_bytes, cap=8192):
    """Largest multiple-of-128 pixel tile dividing n_pad under the VMEM budget.
    Keeps >= 2 blocks when possible so both v7x TensorCores get work."""
    if n_pad <= 128:
        return n_pad
    limit = min(cap, max(128, (budget_bytes // per_col_bytes) // 128 * 128))
    if n_pad >= 256:
        limit = min(limit, n_pad // 2)   # at least 2 grid blocks (v7x megacore)
    best = 128
    t = 128
    while t <= limit:
        if n_pad % t == 0:
            best = t
        t += 128
    return best


def _compiler_params(vmem_limit_bytes):
    return pltpu.CompilerParams(
        dimension_semantics=("parallel",),
        vmem_limit_bytes=int(vmem_limit_bytes),
    )


# ----------------------------------------------------------------------------
# Pass 1: BN1 batch statistics (stats-only; conv1 output never hits HBM)
# ----------------------------------------------------------------------------
def _make_bn1_stats_kernel(T):
    def kernel(x_ref, w1_ref, s_ref, q_ref):
        w1 = w1_ref[...]
        acc_s = None
        acc_q = None
        for t in range(T):                                 # T == 4, static unroll
            z = jnp.dot(w1, x_ref[t], preferred_element_type=jnp.float32)
            if t == 0:
                acc_s = z
                acc_q = z * z
            else:
                acc_s = acc_s + z
                acc_q = acc_q + z * z
        # Single lane (XLU) reduction per accumulator, after the t-loop.
        s_ref[0] = jnp.sum(acc_s, axis=1, keepdims=True)
        q_ref[0] = jnp.sum(acc_q, axis=1, keepdims=True)
    return kernel


def bn1_stats(x_tcn, w1, *, tn, vmem_limit):
    T, cin, n_pad = x_tcn.shape
    c1 = w1.shape[0]
    nb = n_pad // tn
    return pl.pallas_call(
        _make_bn1_stats_kernel(T),
        out_shape=(
            jax.ShapeDtypeStruct((nb, c1, 1), jnp.float32),
            jax.ShapeDtypeStruct((nb, c1, 1), jnp.float32),
        ),
        grid_spec=pltpu.PrefetchScalarGridSpec(
            num_scalar_prefetch=0,
            grid=(nb,),
            in_specs=[
                pl.BlockSpec((T, cin, tn), lambda n: (0, 0, n)),
                pl.BlockSpec((c1, cin), lambda n: (0, 0)),
            ],
            out_specs=[
                pl.BlockSpec((1, c1, 1), lambda n: (n, 0, 0)),
                pl.BlockSpec((1, c1, 1), lambda n: (n, 0, 0)),
            ],
        ),
        compiler_params=_compiler_params(vmem_limit),
    )(x_tcn, w1)


# ----------------------------------------------------------------------------
# Pass 2: conv1 -> BN1 affine -> LIF1 -> conv2 -> BN2 partial statistics
# ----------------------------------------------------------------------------
def _make_bn2_stats_kernel(T, n_valid, n_pad):
    need_mask = n_pad > n_valid

    def kernel(x_ref, w1_ref, sc1_ref, sh1_ref, w2_ref, s_ref, q_ref):
        tn = x_ref.shape[2]
        w1 = w1_ref[...]
        w2 = w2_ref[...]
        c1 = w1.shape[0]
        # Hoist the (c1,1) -> (c1,tn) broadcasts out of the unrolled t-loop.
        sc1 = jnp.broadcast_to(sc1_ref[...], (c1, tn))
        sh1 = jnp.broadcast_to(sh1_ref[...], (c1, tn))
        acc_s = None
        acc_q = None
        mem = None
        spike = None
        for t in range(T):
            y = jnp.dot(w1, x_ref[t], preferred_element_type=jnp.float32) * sc1 + sh1
            mem = y if t == 0 else mem * (DECAY * (1.0 - spike)) + y
            spike = (mem > THRESH).astype(jnp.float32)      # exact 0/1
            z2 = jnp.dot(w2, spike, preferred_element_type=jnp.float32)
            if t == 0:
                acc_s = z2
                acc_q = z2 * z2
            else:
                acc_s = acc_s + z2
                acc_q = acc_q + z2 * z2
        if need_mask:
            # Padded pixel columns run through BN1/LIF1/conv2 (shift1 != 0) but
            # must not contaminate the BN2 batch statistics.
            col0 = pl.program_id(0) * tn
            lane = jax.lax.broadcasted_iota(jnp.int32, (1, tn), 1)
            valid = ((lane + col0) < n_valid).astype(jnp.float32)
            acc_s = acc_s * valid
            acc_q = acc_q * valid
        s_ref[0] = jnp.sum(acc_s, axis=1, keepdims=True)
        q_ref[0] = jnp.sum(acc_q, axis=1, keepdims=True)

    return kernel


def bn2_stats(x_tcn, w1, scale1, shift1, w2, *, tn, n_valid, vmem_limit):
    T, cin, n_pad = x_tcn.shape
    c1 = w1.shape[0]
    c2 = w2.shape[0]
    nb = n_pad // tn
    return pl.pallas_call(
        _make_bn2_stats_kernel(T, n_valid, n_pad),
        out_shape=(
            jax.ShapeDtypeStruct((nb, c2, 1), jnp.float32),
            jax.ShapeDtypeStruct((nb, c2, 1), jnp.float32),
        ),
        grid_spec=pltpu.PrefetchScalarGridSpec(
            num_scalar_prefetch=0,
            grid=(nb,),
            in_specs=[
                pl.BlockSpec((T, cin, tn), lambda n: (0, 0, n)),
                pl.BlockSpec((c1, cin), lambda n: (0, 0)),
                pl.BlockSpec((c1, 1), lambda n: (0, 0)),
                pl.BlockSpec((c1, 1), lambda n: (0, 0)),
                pl.BlockSpec((c2, c1), lambda n: (0, 0)),
            ],
            out_specs=[
                pl.BlockSpec((1, c2, 1), lambda n: (n, 0, 0)),
                pl.BlockSpec((1, c2, 1), lambda n: (n, 0, 0)),
            ],
        ),
        compiler_params=_compiler_params(vmem_limit),
    )(x_tcn, w1, scale1, shift1, w2)


# ----------------------------------------------------------------------------
# Pass 3: full chain conv1 -> BN1 -> LIF1 -> conv2 -> BN2 -> LIF2 -> spikes
# ----------------------------------------------------------------------------
def _make_output_kernel(T):
    def kernel(x_ref, w1_ref, sc1_ref, sh1_ref, w2_ref, sc2_ref, sh2_ref, o_ref):
        tn = x_ref.shape[2]
        w1 = w1_ref[...]
        w2 = w2_ref[...]
        c1 = w1.shape[0]
        c2 = w2.shape[0]
        sc1 = jnp.broadcast_to(sc1_ref[...], (c1, tn))
        sh1 = jnp.broadcast_to(sh1_ref[...], (c1, tn))
        sc2 = jnp.broadcast_to(sc2_ref[...], (c2, tn))
        sh2 = jnp.broadcast_to(sh2_ref[...], (c2, tn))
        mem1 = spike1 = mem2 = spike2 = None
        for t in range(T):
            y1 = jnp.dot(w1, x_ref[t], preferred_element_type=jnp.float32) * sc1 + sh1
            mem1 = y1 if t == 0 else mem1 * (DECAY * (1.0 - spike1)) + y1
            spike1 = (mem1 > THRESH).astype(jnp.float32)
            y2 = jnp.dot(w2, spike1, preferred_element_type=jnp.float32) * sc2 + sh2
            mem2 = y2 if t == 0 else mem2 * (DECAY * (1.0 - spike2)) + y2
            spike2 = (mem2 > THRESH).astype(jnp.float32)
            o_ref[t] = spike2
    return kernel


def lif_output(x_tcn, w1, scale1, shift1, w2, scale2, shift2, *, tn, vmem_limit):
    T, cin, n_pad = x_tcn.shape
    c1 = w1.shape[0]
    c2 = w2.shape[0]
    nb = n_pad // tn
    return pl.pallas_call(
        _make_output_kernel(T),
        out_shape=jax.ShapeDtypeStruct((T, c2, n_pad), jnp.float32),
        grid_spec=pltpu.PrefetchScalarGridSpec(
            num_scalar_prefetch=0,
            grid=(nb,),
            in_specs=[
                pl.BlockSpec((T, cin, tn), lambda n: (0, 0, n)),
                pl.BlockSpec((c1, cin), lambda n: (0, 0)),
                pl.BlockSpec((c1, 1), lambda n: (0, 0)),
                pl.BlockSpec((c1, 1), lambda n: (0, 0)),
                pl.BlockSpec((c2, c1), lambda n: (0, 0)),
                pl.BlockSpec((c2, 1), lambda n: (0, 0)),
                pl.BlockSpec((c2, 1), lambda n: (0, 0)),
            ],
            out_specs=pl.BlockSpec((T, c2, tn), lambda n: (0, 0, n)),
        ),
        compiler_params=_compiler_params(vmem_limit),
    )(x_tcn, w1, scale1, shift1, w2, scale2, shift2)


# ----------------------------------------------------------------------------
# Host-side BN statistic folding
# ----------------------------------------------------------------------------
def _bn_scale_shift(s_part, q_part, gamma, beta, count):
    # Hierarchical accumulation: full-width in-kernel accumulators -> one lane
    # reduce per block -> per-block partials summed here in f32.
    # NOTE: E[z^2]-E[z]^2 in f32; clamped at 0 (threshold-edge spikes may flip
    # by a ULP vs. a centered two-pass variance).
    s = jnp.sum(s_part, axis=0)                      # (C, 1)
    q = jnp.sum(q_part, axis=0)                      # (C, 1)
    mean = s / count
    var = jnp.maximum(q / count - mean * mean, 0.0)  # biased var (BN training mode)
    scale = gamma.reshape(-1, 1) / jnp.sqrt(var + BN_EPS)
    shift = beta.reshape(-1, 1) - mean * scale
    return scale, shift


# ----------------------------------------------------------------------------
# Full MLP forward (layout glue + statistic folding)
# ----------------------------------------------------------------------------
def mlp_forward(x, params):
    """x: (T, B, C, H, W) float32 (NCHW per time-step, like the PyTorch module).

    NOTE: conv biases (params['b1'], 'b2') are intentionally NOT streamed into
    the kernels: a constant per-channel pre-BN bias cancels exactly under
    training-mode BatchNorm mean subtraction. (Eval-mode running-stat BN would
    require the bias to be added back.)
    """
    T, B, C, H, W = x.shape
    N = B * H * W
    w1 = params["w1"]
    w2 = params["w2"]
    c1 = w1.shape[0]
    c2 = w2.shape[0]

    vmem_limit, tile_budget = _vmem_budget()

    # NCHW -> channels-first, pixels-on-lanes: (T, C, N)
    x_tcn = jnp.transpose(x, (0, 2, 1, 3, 4)).reshape(T, C, N)

    # Pad the pixel axis so large lane-dense tiles exist for arbitrary B*H*W.
    n_pad = _round_up(N, _pad_granularity(N))
    if n_pad != N:
        x_tcn = jnp.pad(x_tcn, ((0, 0), (0, 0), (0, n_pad - N)))

    # Per-kernel double-buffered f32 bytes per pixel column (input stream +
    # output stream + live compute buffers), sized independently per pass.
    per_col_1 = 8 * T * C + 12 * c1
    per_col_2 = 8 * T * C + 12 * (c1 + c2)
    per_col_3 = 8 * T * (C + c2) + 12 * (c1 + c2)
    tn1 = _divisor_tile(n_pad, per_col_1, tile_budget)
    tn2 = _divisor_tile(n_pad, per_col_2, tile_budget)
    tn3 = _divisor_tile(n_pad, per_col_3, tile_budget)

    count = float(T * N)   # true element count per channel (padding excluded)

    # Pass 1: BN1 statistics (padded zero columns contribute exactly 0).
    s1, q1 = bn1_stats(x_tcn, w1, tn=tn1, vmem_limit=vmem_limit)
    scale1, shift1 = _bn_scale_shift(s1, q1, params["g1"], params["beta1"], count)

    # Pass 2: recompute conv1 -> BN1 -> LIF1 -> conv2, emit BN2 stats only.
    s2, q2 = bn2_stats(x_tcn, w1, scale1, shift1, w2,
                       tn=tn2, n_valid=N, vmem_limit=vmem_limit)
    scale2, shift2 = _bn_scale_shift(s2, q2, params["g2"], params["beta2"], count)

    # Pass 3: recompute the full chain and emit output spikes.
    spikes = lif_output(x_tcn, w1, scale1, shift1, w2, scale2, shift2,
                        tn=tn3, vmem_limit=vmem_limit)
    spikes = spikes[:, :, :N]
    return spikes.reshape(T, c2, B, H, W).transpose(0, 2, 1, 3, 4)


# ----------------------------------------------------------------------------
# Pure-JAX reference (matches the PyTorch module, including the conv bias)
# ----------------------------------------------------------------------------
def mlp_reference(x, params):
    T, B, C, H, W = x.shape

    def conv_bn(x5, w, b, g, beta):
        cin = x5.shape[2]
        cout = w.shape[0]
        xf = x5.reshape(T * B, cin, H, W)
        z = jnp.einsum("nchw,oc->nohw", xf, w) + b.reshape(1, cout, 1, 1)
        mean = z.mean(axis=(0, 2, 3))
        var = z.var(axis=(0, 2, 3))                 # biased
        zn = (z - mean[:, None, None]) / jnp.sqrt(var[:, None, None] + BN_EPS)
        zn = zn * g.reshape(cout, 1, 1) + beta.reshape(cout, 1, 1)
        return zn.reshape(T, B, cout, H, W)

    def lif(x5):
        outs = []
        mem = x5[0]
        spike = (mem > THRESH).astype(jnp.float32)
        outs.append(spike)
        for i in range(1, x5.shape[0]):
            mem = mem * DECAY * (1.0 - spike) + x5[i]
            spike = (mem > THRESH).astype(jnp.float32)
            outs.append(spike)
        return jnp.stack(outs)

    h1 = lif(conv_bn(x, params["w1"], params["b1"], params["g1"], params["beta1"]))
    h2 = lif(conv_bn(h1, params["w2"], params["b2"], params["g2"], params["beta2"]))
    return h2


if __name__ == "__main__":
    T = TIME_WINDOW
    C = 16
    HIDDEN = 32
    OUT = C                          # out_features defaults to in_features

    key = jax.random.PRNGKey(0)
    kx, kw1, kb1, kw2, kb2, kx2 = jax.random.split(key, 6)

    params = {
        "w1": (0.3 * jax.random.normal(kw1, (HIDDEN, C))).astype(jnp.float32),
        "b1": (0.1 * jax.random.normal(kb1, (HIDDEN,))).astype(jnp.float32),
        "g1": jnp.ones((HIDDEN,), jnp.float32),
        "beta1": jnp.zeros((HIDDEN,), jnp.float32),
        "w2": (0.3 * jax.random.normal(kw2, (OUT, HIDDEN))).astype(jnp.float32),
        "b2": (0.1 * jax.random.normal(kb2, (OUT,))).astype(jnp.float32),
        "g2": jnp.ones((OUT,), jnp.float32),
        "beta2": jnp.zeros((OUT,), jnp.float32),
    }

    # Case 1: lane-dense pixel count, multi-block grid (N = 2*16*16 = 512 -> 2
    # blocks per pass; exercises the multi-block BN partial reduction).
    B, H, W = 2, 16, 16
    x = jax.random.normal(kx, (T, B, C, H, W), dtype=jnp.float32)
    out = jax.block_until_ready(mlp_forward(x, params))
    ref = jax.block_until_ready(mlp_reference(x, params))
    assert out.shape == (T, B, OUT, H, W)
    mismatch = float(jnp.mean(jnp.abs(out - ref)))
    assert mismatch < 1e-2, f"case1 mismatch fraction too high: {mismatch}"

    # Case 2: awkward pixel count (N = 2*10*10 = 200 -> padded to 256, masked
    # BN2 statistics; exercises the padding / mask path).
    B2, H2, W2 = 2, 10, 10
    x2 = jax.random.normal(kx2, (T, B2, C, H2, W2), dtype=jnp.float32)
    out2 = jax.block_until_ready(mlp_forward(x2, params))
    ref2 = jax.block_until_ready(mlp_reference(x2, params))
    assert out2.shape == (T, B2, OUT, H2, W2)
    mismatch2 = float(jnp.mean(jnp.abs(out2 - ref2)))
    assert mismatch2 < 1e-2, f"case2 mismatch fraction too high: {mismatch2}"

    # TODO(synk): ActFun surrogate-gradient backward is not implemented (forward only).
    print("KERNEL_OK")
</pallas_src>

<mosaic_0001>
module attributes {stable_mosaic.version = 11 : i64} {
  func.func @kernel(%arg0: i32, %arg1: memref<4x16x256xf32, #tpu.memory_space<vmem>>, %arg2: memref<32x16xf32, #tpu.memory_space<vmem>>, %arg3: memref<1x32x1xf32, #tpu.memory_space<vmem>>, %arg4: memref<1x32x1xf32, #tpu.memory_space<vmem>>) attributes {dimension_semantics = [#tpu.dimension_semantics<parallel>], iteration_bounds = array<i64: 2>, scalar_prefetch = 0 : i64, scratch_operands = 0 : i64, tpu.core_type = #tpu.core_type<tc>, window_params = [{transform_indices = @transform_0, window_bounds = array<i64: 4, 16, 256>}, {pipeline_mode = #tpu.pipeline_mode<synchronous>, transform_indices = @transform_1, window_bounds = array<i64: 32, 16>}, {transform_indices = @transform_2, window_bounds = array<i64: 1, 32, 1>}, {transform_indices = @transform_3, window_bounds = array<i64: 1, 32, 1>}]} {
    %c0 = arith.constant 0 : index
    %c0_0 = arith.constant 0 : index
    %0 = vector.load %arg2[%c0, %c0_0] : memref<32x16xf32, #tpu.memory_space<vmem>>, vector<32x16xf32>
    %c0_1 = arith.constant 0 : index
    %c0_2 = arith.constant 0 : index
    %c0_3 = arith.constant 0 : index
    %1 = vector.load %arg1[%c0_1, %c0_2, %c0_3] : memref<4x16x256xf32, #tpu.memory_space<vmem>>, vector<1x16x256xf32>
    %2 = vector.shape_cast %1 : vector<1x16x256xf32> to vector<16x256xf32>
    %cst = arith.constant dense<0.000000e+00> : vector<32x256xf32>
    %3 = tpu.matmul %0, %2, %cst {dimension_numbers = #tpu.dot_dimension_numbers<[1], [0], [0], [1], [0, 0, 1, 1], [], []>} : vector<32x16xf32>, vector<16x256xf32>, vector<32x256xf32> -> vector<32x256xf32>
    %4 = arith.mulf %3, %3 : vector<32x256xf32>
    %c1 = arith.constant 1 : index
    %c0_4 = arith.constant 0 : index
    %c0_5 = arith.constant 0 : index
    %5 = vector.load %arg1[%c1, %c0_4, %c0_5] : memref<4x16x256xf32, #tpu.memory_space<vmem>>, vector<1x16x256xf32>
    %6 = vector.shape_cast %5 : vector<1x16x256xf32> to vector<16x256xf32>
    %cst_6 = arith.constant dense<0.000000e+00> : vector<32x256xf32>
    %7 = tpu.matmul %0, %6, %cst_6 {dimension_numbers = #tpu.dot_dimension_numbers<[1], [0], [0], [1], [0, 0, 1, 1], [], []>} : vector<32x16xf32>, vector<16x256xf32>, vector<32x256xf32> -> vector<32x256xf32>
    %8 = arith.addf %3, %7 : vector<32x256xf32>
    %9 = arith.mulf %7, %7 : vector<32x256xf32>
    %10 = arith.addf %4, %9 : vector<32x256xf32>
    %c2 = arith.constant 2 : index
    %c0_7 = arith.constant 0 : index
    %c0_8 = arith.constant 0 : index
    %11 = vector.load %arg1[%c2, %c0_7, %c0_8] : memref<4x16x256xf32, #tpu.memory_space<vmem>>, vector<1x16x256xf32>
    %12 = vector.shape_cast %11 : vector<1x16x256xf32> to vector<16x256xf32>
    %cst_9 = arith.constant dense<0.000000e+00> : vector<32x256xf32>
    %13 = tpu.matmul %0, %12, %cst_9 {dimension_numbers = #tpu.dot_dimension_numbers<[1], [0], [0], [1], [0, 0, 1, 1], [], []>} : vector<32x16xf32>, vector<16x256xf32>, vector<32x256xf32> -> vector<32x256xf32>
    %14 = arith.addf %8, %13 : vector<32x256xf32>
    %15 = arith.mulf %13, %13 : vector<32x256xf32>
    %16 = arith.addf %10, %15 : vector<32x256xf32>
    %c3 = arith.constant 3 : index
    %c0_10 = arith.constant 0 : index
    %c0_11 = arith.constant 0 : index
    %17 = vector.load %arg1[%c3, %c0_10, %c0_11] : memref<4x16x256xf32, #tpu.memory_space<vmem>>, vector<1x16x256xf32>
    %18 = vector.shape_cast %17 : vector<1x16x256xf32> to vector<16x256xf32>
    %cst_12 = arith.constant dense<0.000000e+00> : vector<32x256xf32>
    %19 = tpu.matmul %0, %18, %cst_12 {dimension_numbers = #tpu.dot_dimension_numbers<[1], [0], [0], [1], [0, 0, 1, 1], [], []>} : vector<32x16xf32>, vector<16x256xf32>, vector<32x256xf32> -> vector<32x256xf32>
    %20 = arith.addf %14, %19 : vector<32x256xf32>
    %21 = arith.mulf %19, %19 : vector<32x256xf32>
    %22 = arith.addf %16, %21 : vector<32x256xf32>
    %cst_13 = arith.constant dense<0.000000e+00> : vector<32xf32>
    %23 = vector.multi_reduction <add>, %20, %cst_13 [1] : vector<32x256xf32> to vector<32xf32>
    %24 = vector.shape_cast %23 : vector<32xf32> to vector<32x1xf32>
    %c0_14 = arith.constant 0 : index
    %c0_15 = arith.constant 0 : index
    %c0_16 = arith.constant 0 : index
    %25 = vector.load %arg3[%c0_14, %c0_15, %c0_16] : memref<1x32x1xf32, #tpu.memory_space<vmem>>, vector<1x32x1xf32>
    %26 = vector.shape_cast %25 : vector<1x32x1xf32> to vector<32x1xf32>
    %27 = vector.shape_cast %24 : vector<32x1xf32> to vector<1x32x1xf32>
    tpu.vector_store %arg3[%c0_14, %c0_15, %c0_16], %27 {strides = array<i32>} : memref<1x32x1xf32, #tpu.memory_space<vmem>>, vector<1x32x1xf32>,
    %cst_17 = arith.constant dense<0.000000e+00> : vector<32xf32>
    %28 = vector.multi_reduction <add>, %22, %cst_17 [1] : vector<32x256xf32> to vector<32xf32>
    %29 = vector.shape_cast %28 : vector<32xf32> to vector<32x1xf32>
    %c0_18 = arith.constant 0 : index
    %c0_19 = arith.constant 0 : index
    %c0_20 = arith.constant 0 : index
    %30 = vector.load %arg4[%c0_18, %c0_19, %c0_20] : memref<1x32x1xf32, #tpu.memory_space<vmem>>, vector<1x32x1xf32>
    %31 = vector.shape_cast %30 : vector<1x32x1xf32> to vector<32x1xf32>
    %32 = vector.shape_cast %29 : vector<32x1xf32> to vector<1x32x1xf32>
    tpu.vector_store %arg4[%c0_18, %c0_19, %c0_20], %32 {strides = array<i32>} : memref<1x32x1xf32, #tpu.memory_space<vmem>>, vector<1x32x1xf32>,
    return
  }
  func.func @transform_0(%arg0: i32) -> (i32, i32, i32) {
    %c0_i32 = arith.constant 0 : i32
    %c0_i32_0 = arith.constant 0 : i32
    %c0_i32_1 = arith.constant 0 : i32
    return %c0_i32, %c0_i32_0, %arg0 : i32, i32, i32
  }
  func.func @transform_1(%arg0: i32) -> (i32, i32) {
    %c0_i32 = arith.constant 0 : i32
    %c0_i32_0 = arith.constant 0 : i32
    %c0_i32_1 = arith.constant 0 : i32
    return %c0_i32, %c0_i32_0 : i32, i32
  }
  func.func @transform_2(%arg0: i32) -> (i32, i32, i32) {
    %c0_i32 = arith.constant 0 : i32
    %c0_i32_0 = arith.constant 0 : i32
    %c0_i32_1 = arith.constant 0 : i32
    return %arg0, %c0_i32, %c0_i32_0 : i32, i32, i32
  }
  func.func @transform_3(%arg0: i32) -> (i32, i32, i32) {
    %c0_i32 = arith.constant 0 : i32
    %c0_i32_0 = arith.constant 0 : i32
    %c0_i32_1 = arith.constant 0 : i32
    return %arg0, %c0_i32, %c0_i32_0 : i32, i32, i32
  }
}

</mosaic_0001>

<bundles_post_ra>
// kernel: tpu_custom_call.1
= control target key start
LH: loop header
LB: loop body
LE: loop exit
PB: predicated region body
PF: predicated region fallthrough
CT: control target
= control target key end

     0   :  { %9 = vsyncpa [#allocation3], 0  ;;  %s1179_s0 = inlined_call_operand.hbm [shape: f32[4,16,512], index: 0, kind: input, shape index: {}]   ;;  %s1180_s1 = inlined_call_operand.vmem [shape: f32[32,16], index: 1, kind: input, shape index: {}]   ;;  %s1181_s2 = inlined_call_operand.vmem [shape: f32[2,32,1], index: 2, kind: output, shape index: {0}]   ;;  %s1182_s3 = inlined_call_operand.vmem [shape: f32[2,32,1], index: 3, kind: output, shape index: {1}]  }
   0x1   :  { %11 = vsyncpa [#allocation3 + $0x1], 0  ;;  %s987_s12 = smov 0   ;;  %s989_s13 = smov 0  }
   0x2   :  { %s991_s14 = smov 0   ;;  %s993_s15 = smov 0  }
   0x3 LB: > { %s1006_s16 = sadd.s32 4294967295, %s960_s15   ;;  %s1009_s17 = sadd.s32 1, %s960_s15   ;;  %s960_s15 = sphi %s993_s15, %s1190_s15   ;;  %s956_s14 = sphi %s991_s14, %s1189_s14   ;;  %s952_s13 = sphi %s989_s13, %s1188_s13   ;;  %s948_s12 = sphi %s987_s12, %s1187_s12  }
   0x4   : > { %s21_s18 = ssub.s32 %s960_s15, %s1009_s17  ;;  %s24_s19 = sadd.s32 1, %s956_s14 }
   0x5   : > { %p22_p0 = scmp.eq.s32.totalorder %s21_s18, 0  ;;  %p31_p1 = scmp.ne.s32.totalorder %s956_s14, %s952_s13 }
   0x6   : > { %p32_p2 = scmp.eq.s32.totalorder %s960_s15, 0  ;;  %p37_p3 = scmp.ne.s32.totalorder %s952_s13, %s948_s12 }
   0x7   : > { %s1019_s20 = scalar_select %p22_p0, %s956_s14, %s24_s19  }
   0x8   : > { %p33_p4 = por %p32_p2, %p31_p1  ;;  %p38_p5 = scmp.eq.s32.totalorder %s1006_s16, 0 }
   0x9   : > { %p861_p6 = scmp.lt.s32.totalorder %s960_s15, 2  ;;  %s137_s22 = sand.u32 1, %s956_s14  }
   0xa   : > { %p1023_p7 = por %p38_p5, %p37_p3  ;;  %s813_s23 = sshll.u32 %s137_s22, 7 }
   0xb   : > { %s852_s24 = sshll.u32 %s960_s15, 8  ;;  %s141_s28 = scalar_lea.vmem [#allocation2], %s813_s23 }
   0xc   : > { %s1184_s21 = scalar_select %p1023_p7, 1, 0 }
   0xd   : > { %s1032_s27 = scalar_lea.hbm %s1179_s0, %s852_s24  ;;  %s148_s29 = sshll.u32 %s141_s28, 4  ;;  %s1034_s29 = int_to_ptr.vmem [resolvable:$true] %s148_s29 }
   0xe   : > { %p1036_p8 = pnand %p861_p6, %p33_p4  ;;  %s1040_s4 = scalar_lea.sflag [#allocation3], %s137_s22 }
   0xf   : > { %s898_s5 = scalar_lea.hbm %s1032_s27, 2048  ;;  %s903_s8 = scalar_lea.hbm %s1179_s0, 4096 }
  0x10   : > { %p899_p9 = scmp.ne.s32.totalorder %s1032_s27, %s898_s5  ;;  %p900_p10 = pneg %p1036_p8 }
  0x11   : > { %p904_p13 = scmp.lt.s32.totalorder %s1032_s27, %s1179_s0  ;;  %p905_p0 = scmp.lt.s32.totalorder %s903_s8, %s898_s5 }
  0x12   : > { %p901_p11 = pnand %p900_p10, %p899_p9 }
  0x13   : > { %p906_p1 = por %p905_p0, %p904_p13 }
  0x14   : > { %p902_p12 = pneg %p901_p11 }
  0x16   : > { %p907_p2 = pnand %p906_p1, %p902_p12 }
  0x18   : > { %910 = shalt.err (!%p907_p2)
}
  0x19   : > { %s911_s11 = scalar_lea.vmem %s1034_s29, 2048  ;;  %s962_s12 = smov [#allocation2]  }
  0x1a   : > { %p912_p3 = scmp.ne.s32.totalorder %s1034_s29, %s911_s11  ;;  %s916_s18 = sshll.u32 %s962_s12, 4  ;;  %s917_s18 = int_to_ptr.vmem [resolvable:$false] %s916_s18 }
  0x1b   : > { %s918_s19 = scalar_lea.vmem %s917_s18, 4096  ;;  %p919_p6 = scmp.lt.s32.totalorder %s1034_s29, %s917_s18 }
  0x1c   : > { %p914_p4 = pnand %p912_p3, %p900_p10  ;;  %p920_p9 = scmp.lt.s32.totalorder %s918_s19, %s911_s11 }
  0x1e   : > { %p915_p5 = pneg %p914_p4  ;;  %p921_p11 = por %p920_p9, %p919_p6 }
  0x20   : > { %p922_p7 = pnand %p921_p11, %p915_p5 }
  0x22   : > { %925 = shalt.err (!%p922_p7)
}
  0x23   : > { %s963_s22 = smov 512   ;;  %s964_s23 = smov 256  }
  0x24   : > { %s965_s24 = smov 16   ;;  %p816_p10 = scmp.ge.s32.totalorder %s960_s15, 1 }
  0x25   : > { %860 = dma.hbm_to_vmem [thread:$0]  (!%p1036_p8), %s1032_s27, 2048, %s1034_s29, %s1040_s4, %s963_s22, %s964_s23, %s965_s24  }
  0x26   : > { %p156_p12 = scmp.lt.s32.totalorder %s960_s15, 3 }
  0x28   : > { %p157_p13 = pnand %p816_p10, %p156_p12 }
  0x29   : > { %s162_s25 = sand.u32 (!%p157_p13), 1, %s952_s13   ;;  %p1186_p7 = scmp.ne.s32.totalorder (!%p157_p13), %s1184_s21, 0 }
  0x2a   : > { %160 = sbr.rel (%p157_p13) target bundleno = 428 (0x1ac), region = 28  ;;  %s817_s26 = sshll.u32 (!%p157_p13), %s162_s25, 7 }
  0x2b   : > { %s163_s28 = scalar_lea.sflag (!%p157_p13), [#allocation3], %s162_s25  ;;  %s1064_s5 = scalar_lea.vmem (!%p157_p13), [#allocation2], %s817_s26 }
  0x2f   : > { %943 = dma.done.wait (%p1186_p7), %s163_s28, 2048  }
  0x30   : > { %945 = vsyncadd (%p1186_p7), %s163_s28, 4294965248  ;;  %v966_v0 = vmov 0.0   ;;  %v212_v1 = vld [vmem:[%s1064_s5 + $0x18] sm:$0xff]  ;;  %v211_v3 = vld [vmem:[%s1064_s5 + $0x10] sm:$0xff]  ;;  %vm213_vm0 = vcmask 130048   ;;  %p195_p8 = scmp.lt.s32.totalorder %s1006_s16, 1 }
  0x31   : > { %290 = vmatprep.mubr.f32.mxu0 %v966_v0  ;;  %392 = vmatprep.mubr.f32.mxu1 %v966_v0  ;;  %v829_v2 = vld [vmem:[%s1064_s5 + $0x38] sm:$0xff]  ;;  %v828_v4 = vld [vmem:[%s1064_s5 + $0x30] sm:$0xff]  ;;  %v210_v5 = vld [vmem:[%s1064_s5 + $0x8] sm:$0xff]  ;;  %vm689_vm1 = vcmask 7168  }
  0x32   : > { %254 = vmatprep.subr.mxu0 %v212_v1  ;;  %356 = vmatprep.subr.mxu1 %v829_v2  ;;  %v827_v6 = vld [vmem:[%s1064_s5 + $0x28] sm:$0xff]  ;;  %v209_v7 = vld [vmem:[%s1064_s5] sm:$0xff]  ;;  %v837_v10 = vld [vmem:[%s1064_s5 + $0x58] sm:$0xff]  ;;  %s1192_s16 = smov (!%p195_p8, %s1006_s16), 1 }
  0x33   : > { %255 = vmatpush1.msra.mxu0 %v211_v3  ;;  %357 = vmatpush1.msra.mxu1 %v828_v4  ;;  %v826_v8 = vld [vmem:[%s1064_s5 + $0x20] sm:$0xff]  ;;  %v845_v11 = vld [vmem:[%s1064_s5 + $0x78] sm:$0xff]  ;;  %v836_v12 = vld [vmem:[%s1064_s5 + $0x50] sm:$0xff]  ;;  %s853_s8 = sshll.u32 %s1192_s16, 5 }
  0x34   : > { %v205_v9 = vld [vmem:[%s1180_s1] sm:$0xff]  ;;  %256 = vmatprep.subr.mxu0 %v210_v5  ;;  %358 = vmatprep.subr.mxu1 %v827_v6  ;;  %v844_v13 = vld [vmem:[%s1064_s5 + $0x70] sm:$0xff]  ;;  %v206_v14 = vld [vmem:[%s1180_s1 + $0x8] sm:$0xff]  ;;  %s199_s11 = scalar_lea.vmem %s1181_s2, %s853_s8  ;;  %s204_s19 = scalar_lea.vmem %s1182_s3, %s853_s8 }
  0x35   : > { %257 = vmatpush1.msra.mxu0 %v209_v7  ;;  %359 = vmatpush1.msra.mxu1 %v826_v8  ;;  %v835_v15 = vld [vmem:[%s1064_s5 + $0x48] sm:$0xff]  ;;  %v834_v17 = vld [vmem:[%s1064_s5 + $0x40] sm:$0xff]  ;;  %v207_v19 = vld [vmem:[%s1180_s1 + $0x10] sm:$0xff] }
  0x36   : > { %822 = vmatmul.mubr.msk.f32.vlgmr.msra.gmra.mxu0 %vm213_vm0, %v205_v9  ;;  %830 = vmatmul.mubr.msk.f32.vlgmr.msra.gmra.mxu1 %vm213_vm0, %v205_v9  ;;  %v843_v16 = vld [vmem:[%s1064_s5 + $0x68] sm:$0xff]  ;;  %v842_v18 = vld [vmem:[%s1064_s5 + $0x60] sm:$0xff]  ;;  %v208_v20 = vld [vmem:[%s1180_s1 + $0x18] sm:$0xff] }
  0x37   : > { %474 = vmatprep.subr.mxu0 %v837_v10  ;;  %592 = vmatprep.subr.mxu1 %v845_v11 }
  0x38   : > { %475 = vmatpush1.msra.mxu0 %v836_v12  ;;  %296 = vmatprep.mubr.f32.mxu0 %v966_v0 }
  0x39   : > { %398 = vmatprep.mubr.f32.mxu1 %v966_v0  ;;  %593 = vmatpush1.msra.mxu1 %v844_v13 }
  0x3a   : > { %823 = vmatmul.mubr.msk.f32.gmra.mxu0 %vm213_vm0, %v206_v14  ;;  %831 = vmatmul.mubr.msk.f32.gmra.mxu1 %vm213_vm0, %v206_v14 }
  0x3b   : > { %302 = vmatprep.mubr.f32.mxu0 %v966_v0  ;;  %404 = vmatprep.mubr.f32.mxu1 %v966_v0 }
  0x3c   : > { %476 = vmatprep.subr.mxu0 %v835_v15  ;;  %594 = vmatprep.subr.mxu1 %v843_v16 }
  0x3d   : > { %477 = vmatpush1.msra.mxu0 %v834_v17  ;;  %595 = vmatpush1.msra.mxu1 %v842_v18 }
  0x3e   : > { %824 = vmatmul.mubr.msk.f32.gmra.mxu0 %vm213_vm0, %v207_v19  ;;  %832 = vmatmul.mubr.msk.f32.gmra.mxu1 %vm213_vm0, %v207_v19 }
  0x3f   : > { %308 = vmatprep.mubr.f32.mxu0 %v966_v0  ;;  %410 = vmatprep.mubr.f32.mxu1 %v966_v0 }
  0x42   : > { %825 = vmatmul.mubr.msk.f32.gmra.mxu0 %vm213_vm0, %v208_v20  ;;  %833 = vmatmul.mubr.msk.f32.gmra.mxu1 %vm213_vm0, %v208_v20 }
  0x43   : > { %510 = vmatprep.mubr.f32.mxu0 %v966_v0  ;;  %628 = vmatprep.mubr.f32.mxu1 %v966_v0 }
  0x46   : > { %838 = vmatmul.mubr.msk.f32.vlgmr.msra.gmra.mxu0 %vm213_vm0, %v205_v9  ;;  %846 = vmatmul.mubr.msk.f32.vlgmr.msra.gmra.mxu1 %vm213_vm0, %v205_v9 }
  0x47   : > { %516 = vmatprep.mubr.f32.mxu0 %v966_v0  ;;  %634 = vmatprep.mubr.f32.mxu1 %v966_v0 }
  0x4a   : > { %839 = vmatmul.mubr.msk.f32.gmra.mxu0 %vm213_vm0, %v206_v14  ;;  %847 = vmatmul.mubr.msk.f32.gmra.mxu1 %vm213_vm0, %v206_v14 }
  0x4b   : > { %522 = vmatprep.mubr.f32.mxu0 %v966_v0  ;;  %640 = vmatprep.mubr.f32.mxu1 %v966_v0 }
  0x4e   : > { %840 = vmatmul.mubr.msk.f32.gmra.mxu0 %vm213_vm0, %v207_v19  ;;  %848 = vmatmul.mubr.msk.f32.gmra.mxu1 %vm213_vm0, %v207_v19 }
  0x4f   : > { %528 = vmatprep.mubr.f32.mxu0 %v966_v0  ;;  %646 = vmatprep.mubr.f32.mxu1 %v966_v0 }
  0x52   : > { %841 = vmatmul.mubr.msk.f32.gmra.mxu0 %vm213_vm0, %v208_v20  ;;  %849 = vmatmul.mubr.msk.f32.gmra.mxu1 %vm213_vm0, %v208_v20 }
  0xf6   : > { %v292_v21 = vpop.f32.mrf.mxu0  ;;  %v394_v22 = vpop.f32.mrf.mxu1 }
  0xf7   : > { %v315_v35 = vmul.f32 %v292_v21, %v292_v21  ;;  %v425_v36 = vmul.f32 %v394_v22, %v394_v22  ;;  %v417_v43 = vadd.f32 %v394_v22, %v292_v21 }
  0xf8   : > { %v294_v23 = vpop.f32.mrf.mxu0  ;;  %v396_v24 = vpop.f32.mrf.mxu1 }
  0xf9   : > { %v316_v37 = vmul.f32 %v294_v23, %v294_v23  ;;  %v426_v38 = vmul.f32 %v396_v24, %v396_v24  ;;  %v433_v50 = vadd.f32 %v425_v36, %v315_v35  ;;  %v418_v51 = vadd.f32 %v396_v24, %v294_v23 }
  0xfa   : > { %v298_v25 = vpop.f32.mrf.mxu0  ;;  %v400_v26 = vpop.f32.mrf.mxu1 }
  0xfb   : > { %v317_v39 = vmul.f32 %v298_v25, %v298_v25  ;;  %v427_v40 = vmul.f32 %v400_v26, %v400_v26  ;;  %v434_v52 = vadd.f32 %v426_v38, %v316_v37  ;;  %v419_v53 = vadd.f32 %v400_v26, %v298_v25 }
  0xfc   : > { %v300_v27 = vpop.f32.mrf.mxu0  ;;  %v402_v28 = vpop.f32.mrf.mxu1 }
  0xfd   : > { %v318_v44 = vmul.f32 %v300_v27, %v300_v27  ;;  %v428_v45 = vmul.f32 %v402_v28, %v402_v28  ;;  %v435_v54 = vadd.f32 %v427_v40, %v317_v39  ;;  %v420_v63 = vadd.f32 %v402_v28, %v300_v27 }
  0xfe   : > { %v304_v29 = vpop.f32.mrf.mxu0  ;;  %v406_v30 = vpop.f32.mrf.mxu1 }
  0xff   : > { %v319_v46 = vmul.f32 %v304_v29, %v304_v29  ;;  %v429_v47 = vmul.f32 %v406_v30, %v406_v30  ;;  %v436_v0 = vadd.f32 %v428_v45, %v318_v44  ;;  %v421_v1 = vadd.f32 %v406_v30, %v304_v29 }
 0x100   : > { %v306_v31 = vpop.f32.mrf.mxu0  ;;  %v408_v32 = vpop.f32.mrf.mxu1 }
 0x101   : > { %v320_v59 = vmul.f32 %v306_v31, %v306_v31  ;;  %v430_v60 = vmul.f32 %v408_v32, %v408_v32  ;;  %v437_v2 = vadd.f32 %v429_v47, %v319_v46  ;;  %v422_v5 = vadd.f32 %v408_v32, %v306_v31 }
 0x102   : > { %v1130_v33 = vpop.f32.mrf.mxu0  ;;  %v1132_v34 = vpop.f32.mrf.mxu1 }
 0x103   : > { %v438_v15 = vadd.f32 %v430_v60, %v320_v59  ;;  %v321_v16 = vmul.f32 %v1130_v33, %v1130_v33  ;;  %v431_v25 = vmul.f32 %v1132_v34, %v1132_v34 }
 0x104   : > { %v1134_v41 = vpop.f32.mrf.mxu0  ;;  %v1136_v42 = vpop.f32.mrf.mxu1 }
 0x105   : > { %v322_v26 = vmul.f32 %v1134_v41, %v1134_v41  ;;  %v432_v29 = vmul.f32 %v1136_v42, %v1136_v42 }
 0x106   : > { %v512_v48 = vpop.f32.mrf.mxu0  ;;  %v630_v49 = vpop.f32.mrf.mxu1 }
 0x107   : > { %v535_v55 = vadd.f32 %v512_v48, %v417_v43  ;;  %v543_v56 = vmul.f32 %v512_v48, %v512_v48  ;;  %v661_v11 = vmul.f32 %v630_v49, %v630_v49 }
 0x108   : > { %v514_v57 = vpop.f32.mrf.mxu0  ;;  %v632_v58 = vpop.f32.mrf.mxu1 }
 0x109   : > { %v536_v61 = vadd.f32 %v514_v57, %v418_v51  ;;  %v544_v62 = vmul.f32 %v514_v57, %v514_v57  ;;  %v551_v9 = vadd.f32 %v543_v56, %v433_v50  ;;  %v653_v10 = vadd.f32 %v630_v49, %v535_v55 }
 0x10a   : > { %v518_v3 = vpop.f32.mrf.mxu0  ;;  %v636_v4 = vpop.f32.mrf.mxu1  ;;  %v662_v12 = vmul.f32 %v632_v58, %v632_v58  ;;  %v424_v49 = vadd.f32 %v1136_v42, %v1134_v41 }
 0x10b   : > { %v552_v6 = vadd.f32 %v544_v62, %v434_v52  ;;  %v654_v7 = vadd.f32 %v632_v58, %v536_v61  ;;  %v545_v8 = vmul.f32 %v518_v3, %v518_v3  ;;  %v663_v20 = vmul.f32 %v636_v4, %v636_v4 }
 0x10c   : > { %v520_v13 = vpop.f32.mrf.mxu0  ;;  %v638_v14 = vpop.f32.mrf.mxu1  ;;  %v537_v30 = vadd.f32 %v518_v3, %v419_v53  ;;  %v669_v36 = vadd.f32 %v661_v11, %v551_v9  ;;  %v423_v53 = vadd.f32 %v1132_v34, %v1130_v33  ;;  %v440_v58 = vadd.f32 %v432_v29, %v322_v26 }
 0x10d   : > { %v538_v17 = vadd.f32 %v520_v13, %v420_v63  ;;  %v546_v18 = vmul.f32 %v520_v13, %v520_v13  ;;  %v553_v19 = vadd.f32 %v545_v8, %v435_v54  ;;  %v677_v22 = vadd.f32 %v654_v7, %v653_v10 }
 0x10e   : > { %v524_v21 = vpop.f32.mrf.mxu0  ;;  %v642_v23 = vpop.f32.mrf.mxu1  ;;  %v670_v24 = vadd.f32 %v662_v12, %v552_v6  ;;  %v664_v31 = vmul.f32 %v638_v14, %v638_v14  ;;  %v655_v54 = vadd.f32 %v636_v4, %v537_v30 }
 0x10f   : > { %v554_v27 = vadd.f32 %v546_v18, %v436_v0  ;;  %v547_v28 = vmul.f32 %v524_v21, %v524_v21  ;;  %678 = vadd.xlane.f32.xlu0 %v677_v22  ;;  %v656_v37 = vadd.f32 %v638_v14, %v538_v17  ;;  %v539_v38 = vadd.f32 %v524_v21, %v421_v1 }
 0x110   : > { %v526_v32 = vpop.f32.mrf.mxu0  ;;  %v644_v35 = vpop.f32.mrf.mxu1  ;;  %v694_v45 = vadd.f32 %v670_v24, %v669_v36  ;;  %v671_v47 = vadd.f32 %v663_v20, %v553_v19  ;;  %v665_v52 = vmul.f32 %v642_v23, %v642_v23  ;;  %v439_v1 = vadd.f32 %v431_v25, %v321_v16 }
 0x111   : > { %v540_v39 = vadd.f32 %v526_v32, %v422_v5  ;;  %v548_v40 = vmul.f32 %v526_v32, %v526_v32  ;;  %v666_v44 = vmul.f32 %v644_v35, %v644_v35  ;;  %v672_v48 = vadd.f32 %v664_v31, %v554_v27 }
 0x112   : > { %v530_v43 = vpop.f32.mrf.mxu0  ;;  %v648_v46 = vpop.f32.mrf.mxu1  ;;  %v555_v50 = vadd.f32 %v547_v28, %v437_v2  ;;  %v657_v59 = vadd.f32 %v642_v23, %v539_v38  ;;  %v680_v41 = vadd.f32 %v656_v37, %v655_v54 }
 0x113   : > { %v556_v51 = vadd.f32 %v548_v40, %v438_v15  ;;  %v658_v55 = vadd.f32 %v644_v35, %v540_v39  ;;  %695 = vadd.xlane.f32.xlu0 %v694_v45  ;;  %v697_v57 = vadd.f32 %v672_v48, %v671_v47  ;;  %v541_v63 = vadd.f32 %v530_v43, %v423_v53 }
 0x114   : > { %v532_v56 = vpop.f32.mrf.mxu0  ;;  %v650_v62 = vpop.f32.mrf.mxu1  ;;  %v549_v0 = vmul.f32 %v530_v43, %v530_v43  ;;  %v673_v2 = vadd.f32 %v665_v52, %v555_v50  ;;  %v667_v7 = vmul.f32 %v648_v46, %v648_v46 }
 0x115   : > { %v542_v60 = vadd.f32 %v532_v56, %v424_v49  ;;  %v550_v61 = vmul.f32 %v532_v56, %v532_v56  ;;  %698 = vadd.xlane.f32.xlu1 %v697_v57  ;;  %v674_v42 = vadd.f32 %v666_v44, %v556_v51  ;;  %v668_v33 = vmul.f32 %v650_v62, %v650_v62 }
 0x116   : > { %v683_v34 = vadd.f32 %v658_v55, %v657_v59  ;;  %v557_v4 = vadd.f32 %v549_v0, %v439_v1  ;;  %v659_v6 = vadd.f32 %v648_v46, %v541_v63 }
 0x117   : > { %v558_v3 = vadd.f32 %v550_v61, %v440_v58  ;;  %v660_v5 = vadd.f32 %v650_v62, %v542_v60  ;;  %681 = vadd.xlane.f32.xlu0 %v680_v41  ;;  %v700_v8 = vadd.f32 %v674_v42, %v673_v2 }
 0x118   : > { %v675_v11 = vadd.f32 %v667_v7, %v557_v4 }
 0x119   : > { %684 = vadd.xlane.f32.xlu1 %v683_v34  ;;  %v676_v9 = vadd.f32 %v668_v33, %v558_v3  ;;  %v686_v10 = vadd.f32 %v660_v5, %v659_v6 }
 0x11b   : > { %701 = vadd.xlane.f32.xlu0 %v700_v8  ;;  %v703_v12 = vadd.f32 %v676_v9, %v675_v11 }
 0x11d   : > { %687 = vadd.xlane.f32.xlu1 %v686_v10 }
 0x121   : > { %704 = vadd.xlane.f32.xlu1 %v703_v12 }
 0x198   : > { %v679_v13 = vpop.xlane.xlu0 %678 }
 0x199   : > { %690 = vst.msk [vmem:[%s199_s11] sm:$0xff] %vm689_vm1, %v679_v13 }
 0x19c   : > { %v696_v14 = vpop.xlane.xlu0 %695 }
 0x19d   : > { %706 = vst.msk [vmem:[%s204_s19] sm:$0xff] %vm689_vm1, %v696_v14 }
 0x19e   : > { %v699_v15 = vpop.xlane.xlu1 %698 }
 0x19f   : > { %707 = vst.msk [vmem:[%s204_s19 + $0x8] sm:$0xff] %vm689_vm1, %v699_v15 }
 0x1a0   : > { %v682_v16 = vpop.xlane.xlu0 %681 }
 0x1a1   : > { %691 = vst.msk [vmem:[%s199_s11 + $0x8] sm:$0xff] %vm689_vm1, %v682_v16 }
 0x1a2   : > { %v685_v17 = vpop.xlane.xlu1 %684 }
 0x1a3   : > { %692 = vst.msk [vmem:[%s199_s11 + $0x10] sm:$0xff] %vm689_vm1, %v685_v17 }
 0x1a4   : > { %v702_v18 = vpop.xlane.xlu0 %701 }
 0x1a5   : > { %708 = vst.msk [vmem:[%s204_s19 + $0x10] sm:$0xff] %vm689_vm1, %v702_v18 }
 0x1a6   : > { %v688_v19 = vpop.xlane.xlu1 %687 }
 0x1a7   : > { %693 = vst.msk [vmem:[%s199_s11 + $0x18] sm:$0xff] %vm689_vm1, %v688_v19 }
 0x1aa   : > { %v705_v20 = vpop.xlane.xlu1 %704 }
 0x1ab   : > { %709 = vst.msk [vmem:[%s204_s19 + $0x18] sm:$0xff] %vm689_vm1, %v705_v20 }
 0x1ac PF: > { %p14_p0 = scmp.ge.s32.totalorder %s1009_s17, 4   ;;  %s1187_s12 = smov %s952_s13 }
 0x1ad   : > { %s1188_s13 = smov %s956_s14  ;;  %s1189_s14 = smov %s1019_s20 }
 0x1ae   : > { %s1190_s15 = smov %s1009_s17  ;;  %16 = sbr.rel (!%p14_p0) target bundleno = 3 (0x3), region = 83 }
 0x1b3   :  { %747 = vsyncpa [#allocation3], 1 }
 0x1b4   :  { %749 = vsyncpa [#allocation3 + $0x1], 1 }

</bundles_post_ra>
